<compile_context>
chip_gen: v7x
topology: tpu7x:2x2x1
jax: 0.10.0
libtpu: 0.0.40
codegen_flags: <defaults>
</compile_context>

<pallas_src>
import functools
import math

import jax
import jax.numpy as jnp
from jax import lax
from jax.experimental import pallas as pl
from jax.experimental.pallas import tpu as pltpu


# Contract the last dim of both operands (x @ W.T without materializing W.T;
# the MXU consumes the RHS-transposed form natively).
_NT = (((1,), (1,)), ((), ()))


def _kl_terms(mu, std, eps_w, half_inv_pvar):
    """Per-element (q_logpdf - p_logpdf) with constants hoisted.

    With w = mu + std*eps:
      q_logpdf = c - log(std) - eps^2/2
      p_logpdf = c - p_logvar/2 - w^2 / (2*exp(p_logvar))
    The -0.5*log(2*pi) constants cancel; the caller adds 0.5*p_logvar*N once.
    """
    w = mu + std * eps_w
    return (half_inv_pvar * (w * w)
            - jnp.log(std)
            - jnp.float32(0.5) * (eps_w * eps_w))


# --------------------------------------------------------------------------
# Fused single-block kernels (small layers): one launch -> (out, kl)
# --------------------------------------------------------------------------
def _fused_train_kernel(x_ref, w_ref, eps_ref, alpha_ref, mu_ref, std_ref, epsw_ref,
                        out_ref, kl_ref, *, p_logvar, n_w):
    x = x_ref[...].astype(jnp.float32)
    w = w_ref[...].astype(jnp.float32)
    mean = lax.dot_general(x, w, _NT, preferred_element_type=jnp.float32)
    si2 = lax.dot_general(x * x, w * w, _NT, preferred_element_type=jnp.float32)
    # alpha = exp(log_alpha) is precomputed in the wrapper and read from SMEM.
    si = jnp.sqrt(jnp.float32(1e-8) + alpha_ref[0, 0] * si2)
    out_ref[...] = (mean + si * eps_ref[...].astype(jnp.float32)).astype(out_ref.dtype)

    mu = mu_ref[...].astype(jnp.float32)
    std = std_ref[...].astype(jnp.float32)
    epsw = epsw_ref[...].astype(jnp.float32)
    half_inv_pvar = jnp.float32(0.5 * math.exp(-p_logvar))
    kl_ref[0, 0] = (jnp.sum(_kl_terms(mu, std, epsw, half_inv_pvar))
                    + jnp.float32(0.5 * p_logvar * n_w))


def _fused_eval_kernel(x_ref, w_ref, mu_ref, std_ref, epsw_ref,
                       out_ref, kl_ref, *, p_logvar, n_w):
    # Eval skips the variance branch entirely: no x*x, no second matmul, no sqrt.
    out_ref[...] = lax.dot_general(
        x_ref[...].astype(jnp.float32), w_ref[...].astype(jnp.float32), _NT,
        preferred_element_type=jnp.float32).astype(out_ref.dtype)

    mu = mu_ref[...].astype(jnp.float32)
    std = std_ref[...].astype(jnp.float32)
    epsw = epsw_ref[...].astype(jnp.float32)
    half_inv_pvar = jnp.float32(0.5 * math.exp(-p_logvar))
    kl_ref[0, 0] = (jnp.sum(_kl_terms(mu, std, epsw, half_inv_pvar))
                    + jnp.float32(0.5 * p_logvar * n_w))


# --------------------------------------------------------------------------
# Tiled kernels (production sizes): 3-D grid with dual f32 accumulators
# --------------------------------------------------------------------------
def _tiled_train_kernel(x_ref, w_ref, eps_ref, alpha_ref, out_ref, mean_acc, si2_acc):
    k = pl.program_id(2)

    @pl.when(k == 0)
    def _():
        mean_acc[...] = jnp.zeros_like(mean_acc)
        si2_acc[...] = jnp.zeros_like(si2_acc)

    x = x_ref[...]          # bf16 tile
    w = w_ref[...]          # bf16 tile
    mean_acc[...] += lax.dot_general(x, w, _NT, preferred_element_type=jnp.float32)
    # Squaring rides in free VALU slots under the MXU; keep it in-kernel.
    si2_acc[...] += lax.dot_general(x * x, w * w, _NT,
                                    preferred_element_type=jnp.float32)

    @pl.when(k == pl.num_programs(2) - 1)
    def _():
        si = jnp.sqrt(jnp.float32(1e-8) + alpha_ref[0, 0] * si2_acc[...])
        out_ref[...] = (mean_acc[...]
                        + si * eps_ref[...].astype(jnp.float32)).astype(out_ref.dtype)


def _tiled_eval_kernel(x_ref, w_ref, out_ref, mean_acc):
    k = pl.program_id(2)

    @pl.when(k == 0)
    def _():
        mean_acc[...] = jnp.zeros_like(mean_acc)

    mean_acc[...] += lax.dot_general(x_ref[...], w_ref[...], _NT,
                                     preferred_element_type=jnp.float32)

    @pl.when(k == pl.num_programs(2) - 1)
    def _():
        out_ref[...] = mean_acc[...].astype(out_ref.dtype)


def _kl_partial_kernel(mu_ref, std_ref, epsw_ref, kl_ref, *, half_inv_pvar):
    # One partial sum per (row-block, col-block); summed in JAX outside the kernel.
    # Fully block-parallel (no serial revisited accumulator), megacore-friendly.
    mu = mu_ref[...].astype(jnp.float32)
    std = std_ref[...].astype(jnp.float32)
    epsw = epsw_ref[...].astype(jnp.float32)
    s = jnp.sum(_kl_terms(mu, std, epsw, jnp.float32(half_inv_pvar)))
    kl_ref[...] = jnp.full((1, 1), s, jnp.float32)


# --------------------------------------------------------------------------
# Tile selection helpers
# --------------------------------------------------------------------------
def _pick(dim, cands, prefer_cap=None):
    if prefer_cap is not None:
        for c in cands:
            if c <= prefer_cap and c <= dim and dim % c == 0:
                return c
    for c in cands:
        if c <= dim and dim % c == 0:
            return c
    return None


def _linear_vmem_bytes(tm, tn, tk, training, in_item=2, out_item=4):
    # double-buffered inputs + double-buffered output + f32 accumulators
    ins = 2 * (tm * tk * in_item + tn * tk * in_item)
    if training:
        ins += 2 * tm * tn * 4          # eps_out tile (f32)
    out = 2 * tm * tn * out_item
    acc = (2 if training else 1) * tm * tn * 4
    return ins + out + acc


def _auto_block_sizes(B, Out, In, training):
    """Large, MXU-aligned tiles under a ~10 MiB pipeline VMEM budget.

    tn/tk prefer multiples of 256 (v6e/v7x 2x256x256 MXU; 128-multiples are fine
    on v5e's 4x128x128). tm/tn prefer keeping >= 2 blocks so the two "parallel"
    grid axes still shard across TensorCores (v7x megacore).
    """
    tm = _pick(B, (512, 256, 128, 64, 32, 16, 8), prefer_cap=max(B // 2, 8))
    tn = _pick(Out, (512, 256, 128), prefer_cap=max(Out // 2, 128))
    tk = _pick(In, (2048, 1024, 512, 256, 128))
    if tm is None or tn is None or tk is None:
        return None
    budget = 10 * 1024 * 1024
    while (_linear_vmem_bytes(tm, tn, tk, training) > budget
           and tk > 256 and In % (tk // 2) == 0):
        tk //= 2
    while (_linear_vmem_bytes(tm, tn, tk, training) > budget
           and tm > 8 and B % (tm // 2) == 0):
        tm //= 2
    return tm, tn, tk


def _kl_block_sizes(Out, In, budget_bytes=4 << 20):
    """~3-4 MiB of (mu, std, eps_w) per step, full-In (lane-dense) rows preferred."""
    row_cands = [c for c in (4096, 2048, 1024, 512, 256, 128, 64, 32, 16, 8)
                 if c <= Out and Out % c == 0] or [Out]
    col_raw = [c for c in (In, 8192, 4096, 2048, 1024, 512, 256, 128)
               if c <= In and In % c == 0]
    col_cands, seen = [], set()
    for c in col_raw:
        if c not in seen:
            seen.add(c)
            col_cands.append(c)
    col_cands = col_cands or [In]
    for tc in col_cands:
        for tr in row_cands:
            if 3 * tr * tc * 4 <= budget_bytes:
                return tr, tc
    return row_cands[-1], col_cands[-1]


# --------------------------------------------------------------------------
# Wrapper
# --------------------------------------------------------------------------
def bbb_linear_factorial_forward(x, qw_mean, fc_qw_mean, fc_qw_std, log_alpha,
                                 eps_out, eps_w, *, p_logvar_init=-3.0,
                                 training=True, block_sizes=None,
                                 matmul_dtype=jnp.bfloat16):
    """Pallas implementation of BBBLinearFactorial.fcprobforward -> (output, kl).

    block_sizes=None         : auto — a fused single-launch kernel for small layers,
                               or an auto-tiled 3-D-grid path for large aligned ones.
    block_sizes=(tm, tn, tk) : explicit tiled path (requires B % tm == Out % tn ==
                               In % tk == 0; tm multiple of 8, tn/tk multiples of 128).
    """
    B, In = x.shape
    Out = qw_mean.shape[0]
    n_w = Out * In
    p_logvar = float(p_logvar_init)
    half_inv_pvar = 0.5 * math.exp(-p_logvar)
    out_dtype = x.dtype
    # Hoist exp(log_alpha): a single scalar computed once in XLA, read from SMEM.
    alpha = jnp.exp(jnp.asarray(log_alpha, jnp.float32)).reshape(1, 1)

    if block_sizes is None:
        block_sizes = _auto_block_sizes(B, Out, In, training)
    tiled = False
    if block_sizes is not None:
        tm, tn, tk = block_sizes
        tiled = (B % tm == 0) and (Out % tn == 0) and (In % tk == 0)

    vmem = pltpu.MemorySpace.VMEM
    smem = pltpu.MemorySpace.SMEM

    if not tiled:
        # Small layers: one launch covers both matmuls and the KL reduction.
        out_shape = (jax.ShapeDtypeStruct((B, Out), out_dtype),
                     jax.ShapeDtypeStruct((1, 1), jnp.float32))
        out_specs = (pl.BlockSpec(memory_space=vmem),
                     pl.BlockSpec(memory_space=smem))
        if training:
            out, kl = pl.pallas_call(
                functools.partial(_fused_train_kernel, p_logvar=p_logvar, n_w=n_w),
                out_shape=out_shape,
                in_specs=[pl.BlockSpec(memory_space=vmem),    # x
                          pl.BlockSpec(memory_space=vmem),    # qw_mean
                          pl.BlockSpec(memory_space=vmem),    # eps_out
                          pl.BlockSpec(memory_space=smem),    # alpha (scalar)
                          pl.BlockSpec(memory_space=vmem),    # fc_qw_mean
                          pl.BlockSpec(memory_space=vmem),    # fc_qw_std
                          pl.BlockSpec(memory_space=vmem)],   # eps_w
                out_specs=out_specs,
            )(x, qw_mean, eps_out, alpha, fc_qw_mean, fc_qw_std, eps_w)
        else:
            out, kl = pl.pallas_call(
                functools.partial(_fused_eval_kernel, p_logvar=p_logvar, n_w=n_w),
                out_shape=out_shape,
                in_specs=[pl.BlockSpec(memory_space=vmem)] * 5,
                out_specs=out_specs,
            )(x, qw_mean, fc_qw_mean, fc_qw_std, eps_w)
        return out, kl[0, 0]

    # ---- tiled production path ----
    tm, tn, tk = block_sizes
    grid = (B // tm, Out // tn, In // tk)

    # bf16 MXU inputs (native MXU on all generations, halves HBM matmul traffic);
    # accumulation stays f32 via preferred_element_type + f32 VMEM accumulators.
    x_mm = x.astype(matmul_dtype)
    w_mm = qw_mean.astype(matmul_dtype)
    in_item = jnp.dtype(matmul_dtype).itemsize

    if training:
        lin_kernel = _tiled_train_kernel
        in_specs = [
            pl.BlockSpec((tm, tk), lambda i, j, k: (i, k)),       # x (bf16)
            pl.BlockSpec((tn, tk), lambda i, j, k: (j, k)),       # qw_mean (bf16)
            pl.BlockSpec((tm, tn), lambda i, j, k: (i, j)),       # eps_out (f32)
            pl.BlockSpec(memory_space=smem),                      # alpha (scalar, SMEM)
        ]
        scratch = [pltpu.VMEM((tm, tn), jnp.float32),             # mean accumulator
                   pltpu.VMEM((tm, tn), jnp.float32)]             # si^2 accumulator
        lin_args = (x_mm, w_mm, eps_out, alpha)
    else:
        lin_kernel = _tiled_eval_kernel
        in_specs = [
            pl.BlockSpec((tm, tk), lambda i, j, k: (i, k)),
            pl.BlockSpec((tn, tk), lambda i, j, k: (j, k)),
        ]
        scratch = [pltpu.VMEM((tm, tn), jnp.float32)]
        lin_args = (x_mm, w_mm)

    cp_kwargs = dict(dimension_semantics=("parallel", "parallel", "arbitrary"))
    est = _linear_vmem_bytes(tm, tn, tk, training,
                             in_item=in_item,
                             out_item=jnp.dtype(out_dtype).itemsize)
    if est > 12 * 1024 * 1024:
        # Explicitly-requested tiles beyond the default scoped VMEM: raise the limit
        # (cap well below v7x's 64 MiB physical VMEM).
        cp_kwargs["vmem_limit_bytes"] = int(min(est + est // 2, 56 * 1024 * 1024))

    out = pl.pallas_call(
        lin_kernel,
        out_shape=jax.ShapeDtypeStruct((B, Out), out_dtype),
        grid_spec=pltpu.PrefetchScalarGridSpec(
            num_scalar_prefetch=0,
            grid=grid,
            in_specs=in_specs,
            out_specs=pl.BlockSpec((tm, tn), lambda i, j, k: (i, j)),
            scratch_shapes=scratch),
        compiler_params=pltpu.CompilerParams(**cp_kwargs),
    )(*lin_args)

    # KL over the (Out, In) weight sample: HBM-bound, block-parallel partial sums
    # (summed in JAX) so nothing serializes on a single revisited accumulator.
    tr, tc = _kl_block_sizes(Out, In)
    nr, nc = Out // tr, In // tc
    partials = pl.pallas_call(
        functools.partial(_kl_partial_kernel, half_inv_pvar=half_inv_pvar),
        out_shape=jax.ShapeDtypeStruct((nr, nc), jnp.float32),
        grid_spec=pltpu.PrefetchScalarGridSpec(
            num_scalar_prefetch=0,
            grid=(nr, nc),
            in_specs=[pl.BlockSpec((tr, tc), lambda i, j: (i, j)),
                      pl.BlockSpec((tr, tc), lambda i, j: (i, j)),
                      pl.BlockSpec((tr, tc), lambda i, j: (i, j))],
            out_specs=pl.BlockSpec((1, 1), lambda i, j: (i, j)),
            scratch_shapes=[]),
        compiler_params=pltpu.CompilerParams(
            dimension_semantics=("parallel", "parallel")),
    )(fc_qw_mean, fc_qw_std, eps_w)

    kl = jnp.sum(partials) + jnp.float32(0.5 * p_logvar * n_w)
    return out, kl


# --------------------------------------------------------------------------
# Pure-JAX reference (mirrors the PyTorch module exactly) and demo
# --------------------------------------------------------------------------
def _reference(x, qw_mean, fc_qw_mean, fc_qw_std, log_alpha, eps_out, eps_w,
               p_logvar, training):
    xf = x.astype(jnp.float32)
    wf = qw_mean.astype(jnp.float32)
    mean = xf @ wf.T
    if training:
        qw_var = jnp.exp(log_alpha.astype(jnp.float32)) * wf ** 2
        si = jnp.sqrt(1e-8 + (xf ** 2) @ qw_var.T)
        out = mean + si * eps_out.astype(jnp.float32)
    else:
        out = mean
    mu = fc_qw_mean.astype(jnp.float32)
    std = fc_qw_std.astype(jnp.float32)
    w_s = mu + std * eps_w.astype(jnp.float32)
    c = -0.5 * math.log(2.0 * math.pi)
    q_lp = c - jnp.log(std) - (w_s - mu) ** 2 / (2.0 * std ** 2)
    p_lp = c - 0.5 * p_logvar - w_s ** 2 / (2.0 * math.exp(p_logvar))
    return out, jnp.sum(q_lp - p_lp)


def _assert_close(got, want, tol, name):
    got = jnp.asarray(got, jnp.float32)
    want = jnp.asarray(want, jnp.float32)
    scale = float(jnp.maximum(1.0, jnp.max(jnp.abs(want))))
    err = float(jnp.max(jnp.abs(got - want)))
    assert err <= tol * scale, f"{name}: max abs err {err} > {tol * scale}"


if __name__ == "__main__":
    p_logvar = -3.0

    def make_inputs(key, B, In, Out):
        ks = jax.random.split(key, 7)
        stdv = 10.0 / math.sqrt(In)
        x = jax.random.normal(ks[0], (B, In), jnp.float32)
        qw_mean = jax.random.uniform(ks[1], (Out, In), jnp.float32, minval=-stdv, maxval=stdv)
        fc_qw_mean = jax.random.uniform(ks[2], (Out, In), jnp.float32, minval=-stdv, maxval=stdv)
        # The PyTorch init `uniform(-stdv, stdv) + q_logvar_init` can make this
        # negative (log(std) -> NaN in the module as well); use a positive std so
        # the demo produces finite numbers.  Kernel math matches the module.
        fc_qw_std = jax.random.uniform(ks[3], (Out, In), jnp.float32, minval=0.05, maxval=0.15)
        log_alpha = jax.random.uniform(ks[4], (1, 1), jnp.float32, minval=-stdv, maxval=stdv)
        eps_out = jax.random.normal(ks[5], (B, Out), jnp.float32)   # activation noise
        eps_w = jax.random.normal(ks[6], (Out, In), jnp.float32)    # weight-sample noise
        return x, qw_mean, fc_qw_mean, fc_qw_std, log_alpha, eps_out, eps_w

    k1, k2 = jax.random.split(jax.random.PRNGKey(0))

    # --- small (module-scale) shapes: fused single-launch kernel ---
    small = make_inputs(k1, B=8, In=32, Out=16)
    out_s, kl_s = bbb_linear_factorial_forward(*small, p_logvar_init=p_logvar, training=True)
    (out_s, kl_s) = jax.block_until_ready((out_s, kl_s))
    ref_out, ref_kl = _reference(*small, p_logvar=p_logvar, training=True)
    assert out_s.shape == (8, 16) and kl_s.shape == ()
    assert bool(jnp.all(jnp.isfinite(out_s))) and bool(jnp.isfinite(kl_s))
    _assert_close(out_s, ref_out, 5e-2, "small/train output")
    _assert_close(kl_s, ref_kl, 1e-3, "small/train kl")

    # eval path: variance branch skipped entirely
    out_e, kl_e = bbb_linear_factorial_forward(*small, p_logvar_init=p_logvar, training=False)
    (out_e, kl_e) = jax.block_until_ready((out_e, kl_e))
    ref_out_e, ref_kl_e = _reference(*small, p_logvar=p_logvar, training=False)
    _assert_close(out_e, ref_out_e, 5e-2, "small/eval output")
    _assert_close(kl_e, ref_kl_e, 1e-3, "small/eval kl")

    # --- larger aligned shapes: auto-tiled path (bf16 MXU inputs, f32 accumulate) ---
    med = make_inputs(k2, B=128, In=512, Out=512)
    out_m, kl_m = bbb_linear_factorial_forward(*med, p_logvar_init=p_logvar, training=True)
    (out_m, kl_m) = jax.block_until_ready((out_m, kl_m))
    ref_out_m, ref_kl_m = _reference(*med, p_logvar=p_logvar, training=True)
    _assert_close(out_m, ref_out_m, 5e-2, "tiled/train output")
    _assert_close(kl_m, ref_kl_m, 1e-3, "tiled/train kl")

    print("KERNEL_OK")
</pallas_src>

<mosaic_0001>
module attributes {stable_mosaic.version = 11 : i64} {
  func.func @_fused_train_kernel(%arg0: memref<8x32xf32, #tpu.memory_space<vmem>>, %arg1: memref<16x32xf32, #tpu.memory_space<vmem>>, %arg2: memref<8x16xf32, #tpu.memory_space<vmem>>, %arg3: memref<1x1xf32, #tpu.memory_space<smem>>, %arg4: memref<16x32xf32, #tpu.memory_space<vmem>>, %arg5: memref<16x32xf32, #tpu.memory_space<vmem>>, %arg6: memref<16x32xf32, #tpu.memory_space<vmem>>, %arg7: memref<8x16xf32, #tpu.memory_space<vmem>>, %arg8: memref<1x1xf32, #tpu.memory_space<smem>>) attributes {dimension_semantics = [], scalar_prefetch = 0 : i64, scratch_operands = 0 : i64, tpu.core_type = #tpu.core_type<tc>} {
    %c0 = arith.constant 0 : index
    %c0_0 = arith.constant 0 : index
    %0 = vector.load %arg0[%c0, %c0_0] : memref<8x32xf32, #tpu.memory_space<vmem>>, vector<8x32xf32>
    %c0_1 = arith.constant 0 : index
    %c0_2 = arith.constant 0 : index
    %1 = vector.load %arg1[%c0_1, %c0_2] : memref<16x32xf32, #tpu.memory_space<vmem>>, vector<16x32xf32>
    %cst = arith.constant dense<0.000000e+00> : vector<8x16xf32>
    %2 = tpu.matmul %0, %1, %cst {dimension_numbers = #tpu.dot_dimension_numbers<[1], [1], [0], [0], [0, 0, 1, 0], [], []>} : vector<8x32xf32>, vector<16x32xf32>, vector<8x16xf32> -> vector<8x16xf32>
    %3 = arith.mulf %0, %0 : vector<8x32xf32>
    %4 = arith.mulf %1, %1 : vector<16x32xf32>
    %cst_3 = arith.constant dense<0.000000e+00> : vector<8x16xf32>
    %5 = tpu.matmul %3, %4, %cst_3 {dimension_numbers = #tpu.dot_dimension_numbers<[1], [1], [0], [0], [0, 0, 1, 0], [], []>} : vector<8x32xf32>, vector<16x32xf32>, vector<8x16xf32> -> vector<8x16xf32>
    %c0_4 = arith.constant 0 : index
    %c0_5 = arith.constant 0 : index
    %6 = memref.load %arg3[%c0_4, %c0_5] : memref<1x1xf32, #tpu.memory_space<smem>>
    %7 = vector.broadcast %6 : f32 to vector<8x16xf32>
    %8 = arith.mulf %7, %5 : vector<8x16xf32>
    %cst_6 = arith.constant 9.99999993E-9 : f32
    %9 = vector.broadcast %cst_6 : f32 to vector<8x16xf32>
    %10 = arith.addf %9, %8 : vector<8x16xf32>
    %11 = math.sqrt %10 : vector<8x16xf32>
    %c0_7 = arith.constant 0 : index
    %c0_8 = arith.constant 0 : index
    %12 = vector.load %arg2[%c0_7, %c0_8] : memref<8x16xf32, #tpu.memory_space<vmem>>, vector<8x16xf32>
    %13 = arith.mulf %11, %12 : vector<8x16xf32>
    %14 = arith.addf %2, %13 : vector<8x16xf32>
    %c0_9 = arith.constant 0 : index
    %c0_10 = arith.constant 0 : index
    %15 = vector.load %arg7[%c0_9, %c0_10] : memref<8x16xf32, #tpu.memory_space<vmem>>, vector<8x16xf32>
    tpu.vector_store %arg7[%c0_9, %c0_10], %14 {strides = array<i32>} : memref<8x16xf32, #tpu.memory_space<vmem>>, vector<8x16xf32>,
    %c0_11 = arith.constant 0 : index
    %c0_12 = arith.constant 0 : index
    %16 = vector.load %arg4[%c0_11, %c0_12] : memref<16x32xf32, #tpu.memory_space<vmem>>, vector<16x32xf32>
    %c0_13 = arith.constant 0 : index
    %c0_14 = arith.constant 0 : index
    %17 = vector.load %arg5[%c0_13, %c0_14] : memref<16x32xf32, #tpu.memory_space<vmem>>, vector<16x32xf32>
    %c0_15 = arith.constant 0 : index
    %c0_16 = arith.constant 0 : index
    %18 = vector.load %arg6[%c0_15, %c0_16] : memref<16x32xf32, #tpu.memory_space<vmem>>, vector<16x32xf32>
    %19 = arith.mulf %17, %18 : vector<16x32xf32>
    %20 = arith.addf %16, %19 : vector<16x32xf32>
    %21 = arith.mulf %20, %20 : vector<16x32xf32>
    %cst_17 = arith.constant 10.0427685 : f32
    %22 = vector.broadcast %cst_17 : f32 to vector<16x32xf32>
    %23 = arith.mulf %22, %21 : vector<16x32xf32>
    %24 = math.log %17 : vector<16x32xf32>
    %25 = arith.subf %23, %24 : vector<16x32xf32>
    %26 = arith.mulf %18, %18 : vector<16x32xf32>
    %cst_18 = arith.constant 5.000000e-01 : f32
    %27 = vector.broadcast %cst_18 : f32 to vector<16x32xf32>
    %28 = arith.mulf %27, %26 : vector<16x32xf32>
    %29 = arith.subf %25, %28 : vector<16x32xf32>
    %30 = vector.shape_cast %29 : vector<16x32xf32> to vector<1x16x32xf32>
    %cst_19 = arith.constant dense<0.000000e+00> : vector<1xf32>
    %31 = vector.multi_reduction <add>, %30, %cst_19 [1, 2] : vector<1x16x32xf32> to vector<1xf32>
    %32 = vector.shape_cast %31 : vector<1xf32> to vector<1x1x1xf32>
    %33 = vector.extract %32[0, 0, 0] : f32 from vector<1x1x1xf32>
    %cst_20 = arith.constant -7.680000e+02 : f32
    %34 = arith.addf %33, %cst_20 : f32
    %c0_21 = arith.constant 0 : index
    %c0_22 = arith.constant 0 : index
    %35 = memref.load %arg8[%c0_21, %c0_22] : memref<1x1xf32, #tpu.memory_space<smem>>
    memref.store %34, %arg8[%c0_21, %c0_22] : memref<1x1xf32, #tpu.memory_space<smem>>
    return
  }
}

</mosaic_0001>

<bundles_post_ra>
// kernel: tpu_custom_call.1
= control target key start
LH: loop header
LB: loop body
LE: loop exit
PB: predicated region body
PF: predicated region fallthrough
CT: control target
= control target key end

     0   :  { %15 = vsyncpa [#allocation4], 0  ;;  %s725_s0 = inlined_call_operand.hbm [shape: f32[8,32], index: 0, kind: input, shape index: {}]   ;;  %s726_s1 = inlined_call_operand.hbm [shape: f32[16,32], index: 1, kind: input, shape index: {}]   ;;  %s727_s2 = inlined_call_operand.hbm [shape: f32[8,16], index: 2, kind: input, shape index: {}]   ;;  %s728_s3 = inlined_call_operand.<no memory space> [shape: f32[1,1], index: 3, kind: input, shape index: {}]   ;;  %s729_s4 = inlined_call_operand.hbm [shape: f32[16,32], index: 4, kind: input, shape index: {}]   ;;  %s730_s5 = inlined_call_operand.vmem [shape: f32[16,32], index: 5, kind: input, shape index: {}]   ;;  %s731_s6 = inlined_call_operand.hbm [shape: f32[16,32], index: 6, kind: input, shape index: {}]   ;;  %s732_s7 = inlined_call_operand.hbm [shape: f32[8,16], index: 7, kind: output, shape index: {0}]   ;;  %s733_s8 = inlined_call_operand.hbm [shape: f32[1,1], index: 8, kind: output, shape index: {1}]  }
   0x1   :  { %16 = vsyncpa [#allocation8], 0 }
   0x2   :  { %17 = vsyncpa [#allocation11], 0 }
   0x3   :  { %18 = vsyncpa [#allocation5], 0 }
   0x4   :  { %19 = vsyncpa [#allocation6], 0  ;;  %s552_s27 = smov [#allocation7]   ;;  %s400_s9 = scalar_lea.hbm %s726_s1, 256 }
   0x5   :  { %s35_s28 = sshll.u32 %s552_s27, 4  ;;  %p401_p0 = scmp.ne.s32.totalorder %s726_s1, %s400_s9  ;;  %s36_s28 = int_to_ptr.vmem [resolvable:$true] %s35_s28 }
   0x6   :  { %p404_p1 = scmp.lt.u32.totalorder %s400_s9, %s726_s1 }
   0x8   :  { %p406_p2 = pnand %p404_p1, %p401_p0 }
   0xa   :  { %409 = shalt.err (!%p406_p2)
}
   0xb   :  { %s410_s14 = scalar_lea.vmem %s36_s28, 256  ;;  %p415_p4 = scmp.lt.s32.totalorder %s36_s28, %s36_s28 }
   0xc   :  { %p411_p3 = scmp.ne.s32.totalorder %s36_s28, %s410_s14  ;;  %p416_p5 = scmp.lt.s32.totalorder %s410_s14, %s410_s14 }
   0xe   :  { %p417_p6 = por %p416_p5, %p415_p4 }
  0x10   :  { %p418_p7 = pnand %p417_p6, %p411_p3 }
  0x12   :  { %421 = shalt.err (!%p418_p7)
}
  0x13   :  { %s553_s15 = smov 128   ;;  %s554_s16 = smov 8  }
  0x14   :  { %41 = dma.hbm_to_vmem [thread:$0]  %s726_s1, 256, %s36_s28, [#allocation8], %s553_s15, %s553_s15, %s554_s16  }
  0x15   :  { %s555_s19 = smov [#allocation10]   ;;  %s556_s21 = smov [#allocation3]  }
  0x16   :  { %s59_s20 = sshll.u32 %s555_s19, 4  ;;  %s26_s22 = sshll.u32 %s556_s21, 4  ;;  %s60_s20 = int_to_ptr.vmem [resolvable:$true] %s59_s20  ;;  %s27_s22 = int_to_ptr.vmem [resolvable:$true] %s26_s22 }
  0x17   :  { %s422_s25 = scalar_lea.hbm %s729_s4, 256 }
  0x18   :  { %p423_p8 = scmp.ne.s32.totalorder %s729_s4, %s422_s25  ;;  %p426_p9 = scmp.lt.u32.totalorder %s422_s25, %s729_s4 }
  0x1a   :  { %p428_p10 = pnand %p426_p9, %p423_p8 }
  0x1c   :  { %431 = shalt.err (!%p428_p10)
}
  0x1d   :  { %s432_s1 = scalar_lea.vmem %s60_s20, 256  ;;  %p437_p12 = scmp.lt.s32.totalorder %s60_s20, %s60_s20 }
  0x1e   :  { %p433_p11 = scmp.ne.s32.totalorder %s60_s20, %s432_s1  ;;  %p438_p13 = scmp.lt.s32.totalorder %s432_s1, %s432_s1 }
  0x20   :  { %p439_p0 = por %p438_p13, %p437_p12 }
  0x22   :  { %p440_p1 = pnand %p439_p0, %p433_p11 }
  0x24   :  { %443 = shalt.err (!%p440_p1)
}
  0x25   :  { %65 = dma.hbm_to_vmem [thread:$0]  %s729_s4, 256, %s60_s20, [#allocation11], %s553_s15, %s553_s15, %s554_s16  }
  0x26   :  { %s444_s12 = scalar_lea.hbm %s725_s0, 128 }
  0x27   :  { %p445_p2 = scmp.ne.s32.totalorder %s725_s0, %s444_s12  ;;  %p448_p3 = scmp.lt.u32.totalorder %s444_s12, %s725_s0 }
  0x29   :  { %p450_p4 = pnand %p448_p3, %p445_p2 }
  0x2b   :  { %453 = shalt.err (!%p450_p4)
}
  0x2c   :  { %s454_s19 = scalar_lea.vmem %s27_s22, 128  ;;  %p459_p6 = scmp.lt.s32.totalorder %s27_s22, %s27_s22 }
  0x2d   :  { %p455_p5 = scmp.ne.s32.totalorder %s27_s22, %s454_s19  ;;  %p460_p7 = scmp.lt.s32.totalorder %s454_s19, %s454_s19 }
  0x2f   :  { %p461_p8 = por %p460_p7, %p459_p6 }
  0x31   :  { %p462_p9 = pnand %p461_p8, %p455_p5 }
  0x33   :  { %465 = shalt.err (!%p462_p9)
}
  0x34   :  { %29 = dma.hbm_to_vmem [thread:$0]  %s725_s0, 128, %s27_s22, [#allocation4]  }
  0x35   :  { %s557_s21 = smov [#allocation9]   ;;  %s558_s24 = smov [#allocation12]  }
  0x36   :  { %s48_s23 = sshll.u32 %s557_s21, 4  ;;  %s73_s25 = sshll.u32 %s558_s24, 4  ;;  %s49_s23 = int_to_ptr.vmem [resolvable:$true] %s48_s23  ;;  %s74_s25 = int_to_ptr.vmem [resolvable:$true] %s73_s25 }
  0x37   :  { %s466_s29 = scalar_lea.hbm %s727_s2, 128 }
  0x38   :  { %p467_p10 = scmp.ne.s32.totalorder %s727_s2, %s466_s29  ;;  %p470_p11 = scmp.lt.u32.totalorder %s466_s29, %s727_s2 }
  0x3a   :  { %p472_p12 = pnand %p470_p11, %p467_p10 }
  0x3c   :  { %475 = shalt.err (!%p472_p12)
}
  0x3d   :  { %s476_s0 = scalar_lea.vmem %s49_s23, 128  ;;  %p481_p0 = scmp.lt.s32.totalorder %s49_s23, %s49_s23 }
  0x3e   :  { %p477_p13 = scmp.ne.s32.totalorder %s49_s23, %s476_s0  ;;  %p482_p1 = scmp.lt.s32.totalorder %s476_s0, %s476_s0 }
  0x40   :  { %p483_p2 = por %p482_p1, %p481_p0 }
  0x42   :  { %p484_p3 = pnand %p483_p2, %p477_p13 }
  0x44   :  { %487 = shalt.err (!%p484_p3)
}
  0x45   :  { %51 = dma.hbm_to_vmem [thread:$0]  %s727_s2, 128, %s49_s23, [#allocation8]  }
  0x46   :  { %s488_s13 = scalar_lea.hbm %s731_s6, 256 }
  0x47   :  { %p489_p4 = scmp.ne.s32.totalorder %s731_s6, %s488_s13  ;;  %p492_p5 = scmp.lt.u32.totalorder %s488_s13, %s731_s6 }
  0x49   :  { %p494_p6 = pnand %p492_p5, %p489_p4 }
  0x4b   :  { %497 = shalt.err (!%p494_p6)
}
  0x4c   :  { %s498_s4 = scalar_lea.vmem %s74_s25, 256  ;;  %p503_p8 = scmp.lt.s32.totalorder %s74_s25, %s74_s25 }
  0x4d   :  { %p499_p7 = scmp.ne.s32.totalorder %s74_s25, %s498_s4  ;;  %p504_p9 = scmp.lt.s32.totalorder %s498_s4, %s498_s4 }
  0x4f   :  { %p505_p10 = por %p504_p9, %p503_p8 }
  0x51   :  { %p506_p11 = pnand %p505_p10, %p499_p7 }
  0x53   :  { %509 = shalt.err (!%p506_p11)
}
  0x54   :  { %79 = dma.hbm_to_vmem [thread:$0]  %s731_s6, 256, %s74_s25, [#allocation11], %s553_s15, %s553_s15, %s554_s16  }
  0x55   :  { %542 = dma.done.wait [#allocation4], 128  }
  0x56   :  { %543 = vsyncadd [#allocation4], 4294967168 }
  0x57   :  { %544 = dma.done.wait [#allocation8], 384  }
  0x58   :  { %545 = vsyncadd [#allocation8], 4294966912 }
  0x59   :  { %546 = dma.done.wait [#allocation11], 512  }
  0x5a   :  { %547 = vsyncadd [#allocation11], 4294966784  ;;  %v559_v0 = vmov 0.0|0.0   ;;  %vm560_vm0 = vmmov 0   ;;  %v561_v1 = vmov 0.0   ;;  %vm101_vm1 = vcmask 261120  }
  0x5b   :  { %372 = vmatprep.subr.bf16.mxu0 %v559_v0  ;;  %362 = vmatprep.mubr.msk.f32.mxu0 %vm560_vm0, %v561_v1  ;;  %v96_v2 = vld [vmem:[#allocation7] sm:$0xff]  ;;  %v97_v3 = vld [vmem:[#allocation7 + $0x8] sm:$0xff]  ;;  %vm680_vm2 = vmpackc.low %vm101_vm1, %vm101_vm1  ;;  %v182_v47 = vstv %s728_s3  ;;  %s510_s29 = scalar_lea.hbm %s733_s8, 16 }
  0x5c   :  { %376 = vmatprep.subr.bf16.mxu1 %v559_v0  ;;  %369 = vmatprep.mubr.msk.f32.mxu1 %vm560_vm0, %v561_v1  ;;  %v99_v5 = vmul.f32 %v96_v2, %v96_v2  ;;  %v100_v6 = vmul.f32 %v97_v3, %v97_v3  ;;  %v377_v7 = vpack.c.bf16 %v97_v3, %v96_v2  ;;  %v275_v8 = vld [vmem:[#allocation10] sm:$0xff]  ;;  %v276_v9 = vld [vmem:[#allocation10 + $0x8] sm:$0xff]  ;;  %v279_v12 = vld [vmem:[#allocation12] sm:$0xff]  ;;  %p511_p12 = scmp.ne.s32.totalorder %s733_s8, %s510_s29  ;;  %p514_p13 = scmp.lt.u32.totalorder %s510_s29, %s733_s8 }
  0x5d   :  { %v277_v10 = vld [vmem:[%s730_s5] sm:$0xff]  ;;  %v278_v11 = vld [vmem:[%s730_s5 + $0x8] sm:$0xff]  ;;  %v280_v13 = vld [vmem:[#allocation12 + $0x8] sm:$0xff]  ;;  %v295_v23 = vmul.f32 %v279_v12, %v279_v12 }
  0x5e   :  { %394 = vlog2.f32 %v277_v10  ;;  %v373_v14 = vpack.c.bf16 %v100_v6, %v99_v5  ;;  %379 = vmatpush3.bf16.xpose.msk.msra.mxu1 %vm680_vm2, %v377_v7  ;;  %v281_v15 = vmul.f32 %v279_v12, %v277_v10  ;;  %v282_v16 = vmul.f32 %v280_v13, %v278_v11  ;;  %v95_v17 = vld [vmem:[#allocation3] sm:$0xff]  ;;  %p516_p0 = pnand %p514_p13, %p511_p12 }
  0x5f   :  { %396 = vlog2.f32 %v278_v11  ;;  %v98_v21 = vmul.f32 %v95_v17, %v95_v17  ;;  %v296_v24 = vmul.f32 %v280_v13, %v280_v13  ;;  %v297_v30 = vmul.f32 0.5, %v295_v23 }
  0x60   :  { %375 = vmatpush3.bf16.xpose.msk.msra.mxu0 %vm680_vm2, %v373_v14  ;;  %v283_v18 = vadd.f32 %v281_v15, %v275_v8  ;;  %v284_v19 = vadd.f32 %v282_v16, %v276_v9 }
  0x61   :  { %v298_v32 = vmul.f32 0.5, %v296_v24 }
  0x62   :  { %v285_v20 = vmul.f32 %v283_v18, %v283_v18  ;;  %v286_v22 = vmul.f32 %v284_v19, %v284_v19 }
  0x64   :  { %v287_v25 = vmul.f32 10.0427685, %v285_v20  ;;  %v288_v27 = vmul.f32 10.0427685, %v286_v22 }
  0x65   :  { %370 = vmatmul.mubr.msk.f32.vlgmr.msra.gmra.mrb[0].mxu1 %vm101_vm1, %v95_v17 }
  0x67   :  { %363 = vmatmul.mubr.msk.f32.vlgmr.msra.gmra.mrb[0].mxu0 %vm101_vm1, %v98_v21 }
  0x68   :  { %v395_v26 = vpop.eup %394 }
  0x69   :  { %v397_v28 = vpop.eup %396  ;;  %v290_v29 = vmul.f32 0.6931472, %v395_v26 }
  0x6a   :  { %v292_v31 = vmul.f32 0.6931472, %v397_v28 }
  0x6b   :  { %v293_v33 = vsub.f32 %v287_v25, %v290_v29 }
  0x6c   :  { %v294_v34 = vsub.f32 %v288_v27, %v292_v31 }
  0x6d   :  { %v299_v35 = vsub.f32 %v293_v33, %v297_v30 }
  0x6e   :  { %v300_v36 = vsub.f32 %v294_v34, %v298_v32 }
  0x6f   :  { %v301_v37 = vsel %vm101_vm1, %v299_v35, 0.0 }
  0x70   :  { %v302_v38 = vsel %vm101_vm1, %v300_v36, 0.0 }
  0x71   :  { %v303_v39 = vadd.f32 %v302_v38, %v301_v37 }
  0x73   :  { %304 = vadd.xlane.f32.xlu0 %v303_v39 }
 0x100   :  { %v305_v40 = vpop.xlane.xlu0 %304 }
 0x101   :  { %v306_v41 = vrot.slane %v305_v40, 4 }
 0x103   :  { %v307_v42 = vadd.f32 %v306_v41, %v305_v40 }
 0x105   :  { %v308_v43 = vrot.slane %v307_v42, 2 }
 0x107   :  { %v309_v44 = vadd.f32 %v308_v43, %v307_v42 }
 0x109   :  { %v310_v45 = vrot.slane %v309_v44, 1 }
 0x10b   :  { %v311_v46 = vadd.f32 %v310_v45, %v309_v44 }
 0x10d   :  { %380 = vpush %v311_v46 }
 0x138   :  { %v269_v48 = vpop.f32.mrb[0].mxu1 }
 0x139   :  { %v371_v49 = vpop.f32.mrb[1].mxu1 }
 0x13a   :  { %v177_v50 = vpop.f32.mrb[0].mxu0 }
 0x13b   :  { %v183_v51 = vmul.f32 %v182_v47, %v177_v50  ;;  %v364_v52 = vpop.f32.mrb[1].mxu0 }
 0x13d   :  { %v184_v53 = vadd.f32 1e-08, %v183_v51 }
 0x13e   :  { %s381_s24 = spop %380 }
 0x13f   :  { %s313_s25 = sadd.f32 -768.0, %s381_s24  ;;  %398 = vrsqrt.f32 %v184_v53 }
 0x141   :  { %315 = sst [smem:[#allocation14]] %s313_s25 }
 0x142   :  { %519 = shalt.err (!%p516_p0)
}
 0x143   :  { %s562_s9 = smov [#allocation14]   ;;  %vm187_vm3 = vcmp.eq.f32.partialorder %v184_v53, inf  ;;  %v190_v56 = vand.u32 2147483648, %v184_v53  ;;  %v192_v57 = vld [vmem:[#allocation9] sm:$0xff]  ;;  %vm189_vm4 = vcmp.eq.f32.partialorder %v184_v53, 0.0  ;;  %s563_s10 = smov [#allocation13]  }
 0x144   :  { %333 = dma.smem_to_hbm %s562_s9, 16, %s733_s8, [#allocation6]   ;;  %vm273_vm5 = vcmask 130048  }
 0x145   :  { %s322_s11 = sshll.u32 %s563_s10, 4  ;;  %s323_s11 = int_to_ptr.vmem [resolvable:$true] %s322_s11 }
 0x146   :  { %s520_s12 = scalar_lea.vmem %s323_s11, 128  ;;  %p525_p2 = scmp.lt.s32.totalorder %s323_s11, %s323_s11 }
 0x147   :  { %p521_p1 = scmp.ne.s32.totalorder %s323_s11, %s520_s12  ;;  %p526_p3 = scmp.lt.s32.totalorder %s520_s12, %s520_s12 }
 0x149   :  { %v399_v54 = vpop.eup %398  ;;  %p527_p4 = por %p526_p3, %p525_p2 }
 0x14a   :  { %v186_v55 = vmul.f32 %v399_v54, %v184_v53 }
 0x14b   :  { %p528_p5 = pnand %p527_p4, %p521_p1 }
 0x14c   :  { %v188_v58 = vsel %vm187_vm3, %v184_v53, %v186_v55 }
 0x14d   :  { %v191_v59 = vsel %vm189_vm4, %v190_v56, %v188_v58 }
 0x14e   :  { %v193_v60 = vmul.f32 %v192_v57, %v191_v59 }
 0x150   :  { %v270_v61 = vadd.f32 %v269_v48, %v193_v60 }
 0x152   :  { %274 = vst.msk [vmem:[#allocation13] sm:$0xff] %vm273_vm5, %v270_v61 }
 0x153   :  { %531 = shalt.err (!%p528_p5)
}
 0x154   :  { %s532_s14 = scalar_lea.hbm %s732_s7, 128 }
 0x155   :  { %p533_p6 = scmp.ne.s32.totalorder %s732_s7, %s532_s14  ;;  %p536_p7 = scmp.lt.u32.totalorder %s532_s14, %s732_s7 }
 0x157   :  { %p538_p8 = pnand %p536_p7, %p533_p6 }
 0x159   :  { %541 = shalt.err (!%p538_p8)
}
 0x15a   :  { %325 = dma.vmem_to_hbm [thread:$0]  %s323_s11, 128, %s732_s7, [#allocation5]  }
 0x15b   :  { %548 = dma.done.wait [#allocation5], 128  }
 0x15c   :  { %549 = vsyncadd [#allocation5], 4294967168 }
 0x15d   :  { %550 = dma.done.wait [#allocation6], 16  }
 0x15e   :  { %551 = vsyncadd [#allocation6], 4294967280 }
 0x15f   :  { %340 = sfence }
 0x160   :  { %341 = vsyncpa [#allocation4], 1 }
 0x161   :  { %342 = vsyncpa [#allocation8], 1 }
 0x162   :  { %343 = vsyncpa [#allocation11], 1 }
 0x163   :  { %344 = vsyncpa [#allocation5], 1 }
 0x164   :  { %345 = vsyncpa [#allocation6], 1 }

</bundles_post_ra>
